<compile_context>
chip_gen: v5e
topology: v5e:2x2
jax: 0.10.0
libtpu: 0.0.40
codegen_flags: <defaults>
</compile_context>

<pallas_src>
import functools

import jax
import jax.numpy as jnp
from jax.experimental import pallas as pl
from jax.experimental.pallas import tpu as pltpu


_STATIC_TIME_UNROLL_MAX = 16   # fully-static time loop (no xc scratch) at/below this length


def _pick_batch_block(B):
    # v7x has two TensorCores: give the ("parallel",) batch grid >= 2 programs when the
    # batch is big enough to amortize the ~0.35us per-grid-step overhead; otherwise one
    # block (v5e/v6e single-TC behaviour unchanged, and grid=(1,) at the toy size).
    if B >= 16 and B % 2 == 0:
        return B // 2
    return B


def _vmem_estimate_bytes(t_eff, bb, F, H, L, tgt, *, use_scratch):
    x_block = 2 * t_eff * bb * F * 2                         # double-buffered bf16 input block
    out_block = 2 * bb * tgt * 4                             # double-buffered f32 output block
    weights = 2 * ((F * H + 2 * L * H * H + H * tgt) * 2     # bf16 weights (double-buffered)
                   + (H + L * H + tgt) * 4)                  # f32 biases
    scratch = t_eff * bb * H * 4 if use_scratch else 0
    return x_block + out_block + weights + scratch


def _rnn_kernel(x_ref, w_in_ref, b_in_ref, w_ih_ref, w_hh_ref, b_rec_ref,
                w_out_ref, b_out_ref, out_ref, *scratch,
                num_layers, batch_block, t_eff, static_time_loop, time_unroll):
    """One batch-block of the forecaster.

    x_ref:     (1, t_eff*bb, F) bf16  time-major within block (row = t*bb + j)
    w_in_ref:  (F, H)           bf16  input projection (pre-transposed)
    b_in_ref:  (1, H)           f32
    w_ih_ref:  (L, H, H)        bf16  per-layer input->hidden (pre-transposed)
    w_hh_ref:  (L, H, H)        bf16  per-layer hidden->hidden (pre-transposed)
    b_rec_ref: (L, 1, H)        f32   b_ih + b_hh
    w_out_ref: (H, Tg)          bf16
    b_out_ref: (1, Tg)          f32
    out_ref:   (1, bb, Tg)      f32
    scratch:   () or ((t_eff, bb, H) f32 VMEM,)  -- long-sequence path only
    """
    bb = batch_block
    H = w_in_ref.shape[1]
    cdt = jnp.bfloat16                                   # MXU input dtype (f32 accumulate)

    # ---- input projection for all needed timesteps as one MXU slab ----
    xc = (jnp.dot(x_ref[0], w_in_ref[...], preferred_element_type=jnp.float32)
          + b_in_ref[...])                               # (t_eff*bb, H) f32

    # Loop-invariant recurrent weights loaded once, kept off the per-step chain.
    w_ih = [w_ih_ref[l] for l in range(num_layers)]
    w_hh = [w_hh_ref[l] for l in range(num_layers)]
    b_rec = [b_rec_ref[l] for l in range(num_layers)]

    def layer_stack(inp, carry):
        # Two independent dots per layer (no lane-axis concat on the serial chain);
        # both MXU pushes pipeline in the FIFO.
        new = []
        for l in range(num_layers):
            z = (jnp.dot(inp.astype(cdt), w_ih[l], preferred_element_type=jnp.float32)
                 + jnp.dot(carry[l].astype(cdt), w_hh[l], preferred_element_type=jnp.float32)
                 + b_rec[l])
            hn = jnp.tanh(z)
            new.append(hn)
            inp = hn
        return tuple(new)

    h = tuple(jnp.zeros((bb, H), jnp.float32) for _ in range(num_layers))

    if static_time_loop:
        # Short recurrence: fully static unroll, projected inputs kept as values
        # (no xc scratch store + per-step vld).
        for t in range(t_eff):
            h = layer_stack(xc[t * bb:(t + 1) * bb, :], h)
    else:
        # Long recurrence: stage projected inputs in VMEM, bounded-unroll fori_loop
        # (full unroll would blow up code size with zero extra ILP -- chain is serial).
        xc_ref = scratch[0]
        xc_ref[...] = xc.reshape(t_eff, bb, H)

        def step(t, carry):
            return layer_stack(xc_ref[t], carry)

        h = jax.lax.fori_loop(0, t_eff, step, h, unroll=time_unroll)

    # TODO(synk): if a bundle dump shows the recurrent RHS re-pushed every step, switch to
    # pltpu.matmul_push_rhs / matmul_acc_lhs / matmul_pop to make the weight MXU-stationary.

    # ---- ReLU -> output linear on the selected hidden state ----
    h_sel = jnp.maximum(h[num_layers - 1], 0.0)
    out_ref[0] = (jnp.dot(h_sel.astype(cdt), w_out_ref[...],
                          preferred_element_type=jnp.float32) + b_out_ref[...])


def rnn_forward(x, params, *, num_layers, pred_len, batch_block=None):
    """x: (B, obs_len, F) float32. Returns (B, target_size) float32."""
    (w_in, b_in, w_ih, w_hh, b_ih, b_hh, w_out, b_out) = params
    B, T, F = x.shape
    H = w_in.shape[1]
    target_size = w_out.shape[1]
    # pred_len == 0 would hit the module's buggy negative-zero indexing; unsupported.
    assert 1 <= pred_len <= T - 1

    sel = T - 1 - pred_len               # the only hidden state that reaches the output
    t_eff = sel + 1                      # timesteps that must be run

    # ---- batch-block / grid selection ----
    bb = _pick_batch_block(B) if batch_block is None else batch_block
    assert B % bb == 0
    nb = B // bb

    # ---- wrapper-side layout prep (layout plumbing, not compute) ----
    # Per batch-block, time-major flattened rows (row = t*bb + j): each grid step's x block
    # then covers the full trailing extents (always (8,128)-legal) and the kernel needs no
    # relayouting reshape before the projection GEMM.
    x_prep = x[:, :t_eff, :].astype(jnp.bfloat16)                    # (B, t_eff, F)
    x_prep = x_prep.reshape(nb, bb, t_eff, F)
    x_prep = jnp.transpose(x_prep, (0, 2, 1, 3)).reshape(nb, t_eff * bb, F)

    # bf16 weights (MXU accumulates f32 in-kernel); biases stay f32; recurrent biases fused.
    w_in_b = w_in.astype(jnp.bfloat16)
    w_ih_b = w_ih.astype(jnp.bfloat16)
    w_hh_b = w_hh.astype(jnp.bfloat16)
    w_out_b = w_out.astype(jnp.bfloat16)
    b_rec = b_ih + b_hh                                              # (L, 1, H)

    static_time_loop = t_eff <= _STATIC_TIME_UNROLL_MAX
    scratch_shapes = ([] if static_time_loop
                      else [pltpu.VMEM((t_eff, bb, H), jnp.float32)])

    kernel = functools.partial(
        _rnn_kernel, num_layers=num_layers, batch_block=bb, t_eff=t_eff,
        static_time_loop=static_time_loop, time_unroll=2)

    # VMEM budget: raise the scoped limit only if the estimate exceeds the 32 MiB default,
    # capped well below v7x's 64 MiB physical VMEM.
    est = _vmem_estimate_bytes(t_eff, bb, F, H, num_layers, target_size,
                               use_scratch=not static_time_loop)
    compiler_kwargs = dict(dimension_semantics=("parallel",))
    if est > (28 << 20):
        compiler_kwargs["vmem_limit_bytes"] = min(int(est * 3 // 2), 56 << 20)

    # NOTE: target_size << 128 makes the output store lane-sparse (masked vst); pad the
    # output projection to a multiple of 128 lanes if target_size ever grows.
    out = pl.pallas_call(
        kernel,
        out_shape=jax.ShapeDtypeStruct((nb, bb, target_size), jnp.float32),
        grid_spec=pltpu.PrefetchScalarGridSpec(
            num_scalar_prefetch=0,
            grid=(nb,),
            in_specs=[
                pl.BlockSpec((1, t_eff * bb, F), lambda i: (i, 0, 0)),
                pl.BlockSpec((F, H), lambda i: (0, 0)),
                pl.BlockSpec((1, H), lambda i: (0, 0)),
                pl.BlockSpec((num_layers, H, H), lambda i: (0, 0, 0)),
                pl.BlockSpec((num_layers, H, H), lambda i: (0, 0, 0)),
                pl.BlockSpec((num_layers, 1, H), lambda i: (0, 0, 0)),
                pl.BlockSpec((H, target_size), lambda i: (0, 0)),
                pl.BlockSpec((1, target_size), lambda i: (0, 0)),
            ],
            out_specs=pl.BlockSpec((1, bb, target_size), lambda i: (i, 0, 0)),
            scratch_shapes=scratch_shapes,
        ),
        compiler_params=pltpu.CompilerParams(**compiler_kwargs),
    )(x_prep, w_in_b, b_in, w_ih_b, w_hh_b, b_rec, w_out_b, b_out)

    return out.reshape(B, target_size)


def _reference(x, params, *, num_layers, pred_len):
    """Pure-JAX f32 reference mirroring the (intended) PyTorch forward."""
    (w_in, b_in, w_ih, w_hh, b_ih, b_hh, w_out, b_out) = params
    B, T, F = x.shape
    H = w_in.shape[1]
    xc = x @ w_in + b_in[0]
    h = jnp.zeros((num_layers, B, H), jnp.float32)
    Hbuf = []
    for t in range(T):
        inp = xc[:, t, :]
        new = []
        for l in range(num_layers):
            hn = jnp.tanh(inp @ w_ih[l] + b_ih[l, 0] + h[l] @ w_hh[l] + b_hh[l, 0])
            new.append(hn)
            inp = hn
        h = jnp.stack(new, 0)
        if t != T - 1:
            Hbuf.append(inp)
    Hm = jnp.stack(Hbuf, 1)            # (B, T-1, H)
    Hm = jnp.maximum(Hm, 0.0)
    y = Hm @ w_out + b_out[0]          # (B, T-1, target)
    return y[:, -pred_len, :]


def make_params(key, feature_size, hidden_size, target_size, num_layers):
    """Deterministic synthetic weights (PyTorch-style uniform init), pre-transposed."""
    ks = jax.random.split(key, 8)

    def u(k, shape, fan_in):
        b = 1.0 / jnp.sqrt(jnp.float32(fan_in))
        return jax.random.uniform(k, shape, jnp.float32, -b, b)

    w_in = u(ks[0], (feature_size, hidden_size), feature_size)            # (F, H) == W.T
    b_in = u(ks[1], (1, hidden_size), feature_size)                       # (1, H)
    w_ih = u(ks[2], (num_layers, hidden_size, hidden_size), hidden_size)  # (L, H, H) == W_ih.T
    w_hh = u(ks[3], (num_layers, hidden_size, hidden_size), hidden_size)  # (L, H, H) == W_hh.T
    b_ih = u(ks[4], (num_layers, 1, hidden_size), hidden_size)
    b_hh = u(ks[5], (num_layers, 1, hidden_size), hidden_size)
    w_out = u(ks[6], (hidden_size, target_size), hidden_size)             # (H, Tg) == W.T
    b_out = u(ks[7], (1, target_size), hidden_size)
    return (w_in, b_in, w_ih, w_hh, b_ih, b_hh, w_out, b_out)


if __name__ == "__main__":
    # small config consistent with the module
    batch, obs_len = 2, 8
    feature_size, hidden_size, target_size = 4, 32, 4
    num_layers, pred_len = 2, 2

    key = jax.random.PRNGKey(0)
    kx, kp = jax.random.split(key)
    x = jax.random.normal(kx, (batch, obs_len, feature_size), jnp.float32)
    params = make_params(kp, feature_size, hidden_size, target_size, num_layers)

    out = rnn_forward(x, params, num_layers=num_layers, pred_len=pred_len)
    out = jax.block_until_ready(out)

    ref = _reference(x, params, num_layers=num_layers, pred_len=pred_len)
    assert out.shape == (batch, target_size)
    # bf16 matmul inputs / f32 accumulation -> relaxed tolerance vs the f32 reference.
    assert jnp.allclose(out, ref, atol=5e-2, rtol=5e-2), "mismatch vs reference"

    print("KERNEL_OK")
</pallas_src>

<mosaic_0001>
module attributes {stable_mosaic.version = 11 : i64} {
  func.func @_rnn_kernel(%arg0: i32, %arg1: memref<1x12x4xbf16, #tpu.memory_space<vmem>>, %arg2: memref<4x32xbf16, #tpu.memory_space<vmem>>, %arg3: memref<1x32xf32, #tpu.memory_space<vmem>>, %arg4: memref<2x32x32xbf16, #tpu.memory_space<vmem>>, %arg5: memref<2x32x32xbf16, #tpu.memory_space<vmem>>, %arg6: memref<2x1x32xf32, #tpu.memory_space<vmem>>, %arg7: memref<32x4xbf16, #tpu.memory_space<vmem>>, %arg8: memref<1x4xf32, #tpu.memory_space<vmem>>, %arg9: memref<1x2x4xf32, #tpu.memory_space<vmem>>) attributes {dimension_semantics = [#tpu.dimension_semantics<parallel>], iteration_bounds = array<i64: 1>, scalar_prefetch = 0 : i64, scratch_operands = 0 : i64, tpu.core_type = #tpu.core_type<tc>, window_params = [{transform_indices = @transform_0, window_bounds = array<i64: 1, 12, 4>}, {pipeline_mode = #tpu.pipeline_mode<synchronous>, transform_indices = @transform_1, window_bounds = array<i64: 4, 32>}, {pipeline_mode = #tpu.pipeline_mode<synchronous>, transform_indices = @transform_2, window_bounds = array<i64: 1, 32>}, {pipeline_mode = #tpu.pipeline_mode<synchronous>, transform_indices = @transform_3, window_bounds = array<i64: 2, 32, 32>}, {pipeline_mode = #tpu.pipeline_mode<synchronous>, transform_indices = @transform_4, window_bounds = array<i64: 2, 32, 32>}, {pipeline_mode = #tpu.pipeline_mode<synchronous>, transform_indices = @transform_5, window_bounds = array<i64: 2, 1, 32>}, {pipeline_mode = #tpu.pipeline_mode<synchronous>, transform_indices = @transform_6, window_bounds = array<i64: 32, 4>}, {pipeline_mode = #tpu.pipeline_mode<synchronous>, transform_indices = @transform_7, window_bounds = array<i64: 1, 4>}, {transform_indices = @transform_8, window_bounds = array<i64: 1, 2, 4>}]} {
    %c0 = arith.constant 0 : index
    %c0_0 = arith.constant 0 : index
    %c0_1 = arith.constant 0 : index
    %0 = vector.load %arg1[%c0, %c0_0, %c0_1] : memref<1x12x4xbf16, #tpu.memory_space<vmem>>, vector<1x12x4xbf16>
    %1 = vector.shape_cast %0 : vector<1x12x4xbf16> to vector<12x4xbf16>
    %c0_2 = arith.constant 0 : index
    %c0_3 = arith.constant 0 : index
    %2 = vector.load %arg2[%c0_2, %c0_3] : memref<4x32xbf16, #tpu.memory_space<vmem>>, vector<4x32xbf16>
    %cst = arith.constant dense<0.000000e+00> : vector<12x32xf32>
    %3 = tpu.matmul %1, %2, %cst {dimension_numbers = #tpu.dot_dimension_numbers<[1], [0], [0], [1], [0, 0, 1, 1], [], []>} : vector<12x4xbf16>, vector<4x32xbf16>, vector<12x32xf32> -> vector<12x32xf32>
    %c0_4 = arith.constant 0 : index
    %c0_5 = arith.constant 0 : index
    %4 = vector.load %arg3[%c0_4, %c0_5] : memref<1x32xf32, #tpu.memory_space<vmem>>, vector<1x32xf32>
    %5 = vector.broadcast %4 : vector<1x32xf32> to vector<12x32xf32>
    %6 = arith.addf %3, %5 : vector<12x32xf32>
    %c0_6 = arith.constant 0 : index
    %c0_7 = arith.constant 0 : index
    %c0_8 = arith.constant 0 : index
    %7 = vector.load %arg4[%c0_6, %c0_7, %c0_8] : memref<2x32x32xbf16, #tpu.memory_space<vmem>>, vector<1x32x32xbf16>
    %8 = vector.shape_cast %7 : vector<1x32x32xbf16> to vector<32x32xbf16>
    %c1 = arith.constant 1 : index
    %c0_9 = arith.constant 0 : index
    %c0_10 = arith.constant 0 : index
    %9 = vector.load %arg4[%c1, %c0_9, %c0_10] : memref<2x32x32xbf16, #tpu.memory_space<vmem>>, vector<1x32x32xbf16>
    %10 = vector.shape_cast %9 : vector<1x32x32xbf16> to vector<32x32xbf16>
    %c0_11 = arith.constant 0 : index
    %c0_12 = arith.constant 0 : index
    %c0_13 = arith.constant 0 : index
    %11 = vector.load %arg5[%c0_11, %c0_12, %c0_13] : memref<2x32x32xbf16, #tpu.memory_space<vmem>>, vector<1x32x32xbf16>
    %12 = vector.shape_cast %11 : vector<1x32x32xbf16> to vector<32x32xbf16>
    %c1_14 = arith.constant 1 : index
    %c0_15 = arith.constant 0 : index
    %c0_16 = arith.constant 0 : index
    %13 = vector.load %arg5[%c1_14, %c0_15, %c0_16] : memref<2x32x32xbf16, #tpu.memory_space<vmem>>, vector<1x32x32xbf16>
    %14 = vector.shape_cast %13 : vector<1x32x32xbf16> to vector<32x32xbf16>
    %c0_17 = arith.constant 0 : index
    %c0_18 = arith.constant 0 : index
    %c0_19 = arith.constant 0 : index
    %15 = vector.load %arg6[%c0_17, %c0_18, %c0_19] : memref<2x1x32xf32, #tpu.memory_space<vmem>>, vector<1x1x32xf32>
    %16 = vector.shape_cast %15 : vector<1x1x32xf32> to vector<1x32xf32>
    %c1_20 = arith.constant 1 : index
    %c0_21 = arith.constant 0 : index
    %c0_22 = arith.constant 0 : index
    %17 = vector.load %arg6[%c1_20, %c0_21, %c0_22] : memref<2x1x32xf32, #tpu.memory_space<vmem>>, vector<1x1x32xf32>
    %18 = vector.shape_cast %17 : vector<1x1x32xf32> to vector<1x32xf32>
    %cst_23 = arith.constant 0.000000e+00 : f32
    %19 = vector.broadcast %cst_23 : f32 to vector<2x32xf32>
    %cst_24 = arith.constant 0.000000e+00 : f32
    %20 = vector.broadcast %cst_24 : f32 to vector<2x32xf32>
    %21 = vector.extract_strided_slice %6 {offsets = [0, 0], sizes = [2, 32], strides = [1, 1]} : vector<12x32xf32> to vector<2x32xf32>
    %22 = arith.truncf %21 : vector<2x32xf32> to vector<2x32xbf16>
    %cst_25 = arith.constant dense<0.000000e+00> : vector<2x32xf32>
    %23 = tpu.matmul %22, %8, %cst_25 {dimension_numbers = #tpu.dot_dimension_numbers<[1], [0], [0], [1], [0, 0, 1, 1], [], []>} : vector<2x32xbf16>, vector<32x32xbf16>, vector<2x32xf32> -> vector<2x32xf32>
    %24 = arith.truncf %19 : vector<2x32xf32> to vector<2x32xbf16>
    %cst_26 = arith.constant dense<0.000000e+00> : vector<2x32xf32>
    %25 = tpu.matmul %24, %12, %cst_26 {dimension_numbers = #tpu.dot_dimension_numbers<[1], [0], [0], [1], [0, 0, 1, 1], [], []>} : vector<2x32xbf16>, vector<32x32xbf16>, vector<2x32xf32> -> vector<2x32xf32>
    %26 = arith.addf %23, %25 : vector<2x32xf32>
    %27 = vector.broadcast %16 : vector<1x32xf32> to vector<2x32xf32>
    %28 = arith.addf %26, %27 : vector<2x32xf32>
    %29 = math.tanh %28 : vector<2x32xf32>
    %30 = arith.truncf %29 : vector<2x32xf32> to vector<2x32xbf16>
    %cst_27 = arith.constant dense<0.000000e+00> : vector<2x32xf32>
    %31 = tpu.matmul %30, %10, %cst_27 {dimension_numbers = #tpu.dot_dimension_numbers<[1], [0], [0], [1], [0, 0, 1, 1], [], []>} : vector<2x32xbf16>, vector<32x32xbf16>, vector<2x32xf32> -> vector<2x32xf32>
    %32 = arith.truncf %20 : vector<2x32xf32> to vector<2x32xbf16>
    %cst_28 = arith.constant dense<0.000000e+00> : vector<2x32xf32>
    %33 = tpu.matmul %32, %14, %cst_28 {dimension_numbers = #tpu.dot_dimension_numbers<[1], [0], [0], [1], [0, 0, 1, 1], [], []>} : vector<2x32xbf16>, vector<32x32xbf16>, vector<2x32xf32> -> vector<2x32xf32>
    %34 = arith.addf %31, %33 : vector<2x32xf32>
    %35 = vector.broadcast %18 : vector<1x32xf32> to vector<2x32xf32>
    %36 = arith.addf %34, %35 : vector<2x32xf32>
    %37 = math.tanh %36 : vector<2x32xf32>
    %38 = vector.extract_strided_slice %6 {offsets = [2, 0], sizes = [2, 32], strides = [1, 1]} : vector<12x32xf32> to vector<2x32xf32>
    %39 = arith.truncf %38 : vector<2x32xf32> to vector<2x32xbf16>
    %cst_29 = arith.constant dense<0.000000e+00> : vector<2x32xf32>
    %40 = tpu.matmul %39, %8, %cst_29 {dimension_numbers = #tpu.dot_dimension_numbers<[1], [0], [0], [1], [0, 0, 1, 1], [], []>} : vector<2x32xbf16>, vector<32x32xbf16>, vector<2x32xf32> -> vector<2x32xf32>
    %41 = arith.truncf %29 : vector<2x32xf32> to vector<2x32xbf16>
    %cst_30 = arith.constant dense<0.000000e+00> : vector<2x32xf32>
    %42 = tpu.matmul %41, %12, %cst_30 {dimension_numbers = #tpu.dot_dimension_numbers<[1], [0], [0], [1], [0, 0, 1, 1], [], []>} : vector<2x32xbf16>, vector<32x32xbf16>, vector<2x32xf32> -> vector<2x32xf32>
    %43 = arith.addf %40, %42 : vector<2x32xf32>
    %44 = vector.broadcast %16 : vector<1x32xf32> to vector<2x32xf32>
    %45 = arith.addf %43, %44 : vector<2x32xf32>
    %46 = math.tanh %45 : vector<2x32xf32>
    %47 = arith.truncf %46 : vector<2x32xf32> to vector<2x32xbf16>
    %cst_31 = arith.constant dense<0.000000e+00> : vector<2x32xf32>
    %48 = tpu.matmul %47, %10, %cst_31 {dimension_numbers = #tpu.dot_dimension_numbers<[1], [0], [0], [1], [0, 0, 1, 1], [], []>} : vector<2x32xbf16>, vector<32x32xbf16>, vector<2x32xf32> -> vector<2x32xf32>
    %49 = arith.truncf %37 : vector<2x32xf32> to vector<2x32xbf16>
    %cst_32 = arith.constant dense<0.000000e+00> : vector<2x32xf32>
    %50 = tpu.matmul %49, %14, %cst_32 {dimension_numbers = #tpu.dot_dimension_numbers<[1], [0], [0], [1], [0, 0, 1, 1], [], []>} : vector<2x32xbf16>, vector<32x32xbf16>, vector<2x32xf32> -> vector<2x32xf32>
    %51 = arith.addf %48, %50 : vector<2x32xf32>
    %52 = vector.broadcast %18 : vector<1x32xf32> to vector<2x32xf32>
    %53 = arith.addf %51, %52 : vector<2x32xf32>
    %54 = math.tanh %53 : vector<2x32xf32>
    %55 = vector.extract_strided_slice %6 {offsets = [4, 0], sizes = [2, 32], strides = [1, 1]} : vector<12x32xf32> to vector<2x32xf32>
    %56 = arith.truncf %55 : vector<2x32xf32> to vector<2x32xbf16>
    %cst_33 = arith.constant dense<0.000000e+00> : vector<2x32xf32>
    %57 = tpu.matmul %56, %8, %cst_33 {dimension_numbers = #tpu.dot_dimension_numbers<[1], [0], [0], [1], [0, 0, 1, 1], [], []>} : vector<2x32xbf16>, vector<32x32xbf16>, vector<2x32xf32> -> vector<2x32xf32>
    %58 = arith.truncf %46 : vector<2x32xf32> to vector<2x32xbf16>
    %cst_34 = arith.constant dense<0.000000e+00> : vector<2x32xf32>
    %59 = tpu.matmul %58, %12, %cst_34 {dimension_numbers = #tpu.dot_dimension_numbers<[1], [0], [0], [1], [0, 0, 1, 1], [], []>} : vector<2x32xbf16>, vector<32x32xbf16>, vector<2x32xf32> -> vector<2x32xf32>
    %60 = arith.addf %57, %59 : vector<2x32xf32>
    %61 = vector.broadcast %16 : vector<1x32xf32> to vector<2x32xf32>
    %62 = arith.addf %60, %61 : vector<2x32xf32>
    %63 = math.tanh %62 : vector<2x32xf32>
    %64 = arith.truncf %63 : vector<2x32xf32> to vector<2x32xbf16>
    %cst_35 = arith.constant dense<0.000000e+00> : vector<2x32xf32>
    %65 = tpu.matmul %64, %10, %cst_35 {dimension_numbers = #tpu.dot_dimension_numbers<[1], [0], [0], [1], [0, 0, 1, 1], [], []>} : vector<2x32xbf16>, vector<32x32xbf16>, vector<2x32xf32> -> vector<2x32xf32>
    %66 = arith.truncf %54 : vector<2x32xf32> to vector<2x32xbf16>
    %cst_36 = arith.constant dense<0.000000e+00> : vector<2x32xf32>
    %67 = tpu.matmul %66, %14, %cst_36 {dimension_numbers = #tpu.dot_dimension_numbers<[1], [0], [0], [1], [0, 0, 1, 1], [], []>} : vector<2x32xbf16>, vector<32x32xbf16>, vector<2x32xf32> -> vector<2x32xf32>
    %68 = arith.addf %65, %67 : vector<2x32xf32>
    %69 = vector.broadcast %18 : vector<1x32xf32> to vector<2x32xf32>
    %70 = arith.addf %68, %69 : vector<2x32xf32>
    %71 = math.tanh %70 : vector<2x32xf32>
    %72 = vector.extract_strided_slice %6 {offsets = [6, 0], sizes = [2, 32], strides = [1, 1]} : vector<12x32xf32> to vector<2x32xf32>
    %73 = arith.truncf %72 : vector<2x32xf32> to vector<2x32xbf16>
    %cst_37 = arith.constant dense<0.000000e+00> : vector<2x32xf32>
    %74 = tpu.matmul %73, %8, %cst_37 {dimension_numbers = #tpu.dot_dimension_numbers<[1], [0], [0], [1], [0, 0, 1, 1], [], []>} : vector<2x32xbf16>, vector<32x32xbf16>, vector<2x32xf32> -> vector<2x32xf32>
    %75 = arith.truncf %63 : vector<2x32xf32> to vector<2x32xbf16>
    %cst_38 = arith.constant dense<0.000000e+00> : vector<2x32xf32>
    %76 = tpu.matmul %75, %12, %cst_38 {dimension_numbers = #tpu.dot_dimension_numbers<[1], [0], [0], [1], [0, 0, 1, 1], [], []>} : vector<2x32xbf16>, vector<32x32xbf16>, vector<2x32xf32> -> vector<2x32xf32>
    %77 = arith.addf %74, %76 : vector<2x32xf32>
    %78 = vector.broadcast %16 : vector<1x32xf32> to vector<2x32xf32>
    %79 = arith.addf %77, %78 : vector<2x32xf32>
    %80 = math.tanh %79 : vector<2x32xf32>
    %81 = arith.truncf %80 : vector<2x32xf32> to vector<2x32xbf16>
    %cst_39 = arith.constant dense<0.000000e+00> : vector<2x32xf32>
    %82 = tpu.matmul %81, %10, %cst_39 {dimension_numbers = #tpu.dot_dimension_numbers<[1], [0], [0], [1], [0, 0, 1, 1], [], []>} : vector<2x32xbf16>, vector<32x32xbf16>, vector<2x32xf32> -> vector<2x32xf32>
    %83 = arith.truncf %71 : vector<2x32xf32> to vector<2x32xbf16>
    %cst_40 = arith.constant dense<0.000000e+00> : vector<2x32xf32>
    %84 = tpu.matmul %83, %14, %cst_40 {dimension_numbers = #tpu.dot_dimension_numbers<[1], [0], [0], [1], [0, 0, 1, 1], [], []>} : vector<2x32xbf16>, vector<32x32xbf16>, vector<2x32xf32> -> vector<2x32xf32>
    %85 = arith.addf %82, %84 : vector<2x32xf32>
    %86 = vector.broadcast %18 : vector<1x32xf32> to vector<2x32xf32>
    %87 = arith.addf %85, %86 : vector<2x32xf32>
    %88 = math.tanh %87 : vector<2x32xf32>
    %89 = vector.extract_strided_slice %6 {offsets = [8, 0], sizes = [2, 32], strides = [1, 1]} : vector<12x32xf32> to vector<2x32xf32>
    %90 = arith.truncf %89 : vector<2x32xf32> to vector<2x32xbf16>
    %cst_41 = arith.constant dense<0.000000e+00> : vector<2x32xf32>
    %91 = tpu.matmul %90, %8, %cst_41 {dimension_numbers = #tpu.dot_dimension_numbers<[1], [0], [0], [1], [0, 0, 1, 1], [], []>} : vector<2x32xbf16>, vector<32x32xbf16>, vector<2x32xf32> -> vector<2x32xf32>
    %92 = arith.truncf %80 : vector<2x32xf32> to vector<2x32xbf16>
    %cst_42 = arith.constant dense<0.000000e+00> : vector<2x32xf32>
    %93 = tpu.matmul %92, %12, %cst_42 {dimension_numbers = #tpu.dot_dimension_numbers<[1], [0], [0], [1], [0, 0, 1, 1], [], []>} : vector<2x32xbf16>, vector<32x32xbf16>, vector<2x32xf32> -> vector<2x32xf32>
    %94 = arith.addf %91, %93 : vector<2x32xf32>
    %95 = vector.broadcast %16 : vector<1x32xf32> to vector<2x32xf32>
    %96 = arith.addf %94, %95 : vector<2x32xf32>
    %97 = math.tanh %96 : vector<2x32xf32>
    %98 = arith.truncf %97 : vector<2x32xf32> to vector<2x32xbf16>
    %cst_43 = arith.constant dense<0.000000e+00> : vector<2x32xf32>
    %99 = tpu.matmul %98, %10, %cst_43 {dimension_numbers = #tpu.dot_dimension_numbers<[1], [0], [0], [1], [0, 0, 1, 1], [], []>} : vector<2x32xbf16>, vector<32x32xbf16>, vector<2x32xf32> -> vector<2x32xf32>
    %100 = arith.truncf %88 : vector<2x32xf32> to vector<2x32xbf16>
    %cst_44 = arith.constant dense<0.000000e+00> : vector<2x32xf32>
    %101 = tpu.matmul %100, %14, %cst_44 {dimension_numbers = #tpu.dot_dimension_numbers<[1], [0], [0], [1], [0, 0, 1, 1], [], []>} : vector<2x32xbf16>, vector<32x32xbf16>, vector<2x32xf32> -> vector<2x32xf32>
    %102 = arith.addf %99, %101 : vector<2x32xf32>
    %103 = vector.broadcast %18 : vector<1x32xf32> to vector<2x32xf32>
    %104 = arith.addf %102, %103 : vector<2x32xf32>
    %105 = math.tanh %104 : vector<2x32xf32>
    %106 = vector.extract_strided_slice %6 {offsets = [10, 0], sizes = [2, 32], strides = [1, 1]} : vector<12x32xf32> to vector<2x32xf32>
    %107 = arith.truncf %106 : vector<2x32xf32> to vector<2x32xbf16>
    %cst_45 = arith.constant dense<0.000000e+00> : vector<2x32xf32>
    %108 = tpu.matmul %107, %8, %cst_45 {dimension_numbers = #tpu.dot_dimension_numbers<[1], [0], [0], [1], [0, 0, 1, 1], [], []>} : vector<2x32xbf16>, vector<32x32xbf16>, vector<2x32xf32> -> vector<2x32xf32>
    %109 = arith.truncf %97 : vector<2x32xf32> to vector<2x32xbf16>
    %cst_46 = arith.constant dense<0.000000e+00> : vector<2x32xf32>
    %110 = tpu.matmul %109, %12, %cst_46 {dimension_numbers = #tpu.dot_dimension_numbers<[1], [0], [0], [1], [0, 0, 1, 1], [], []>} : vector<2x32xbf16>, vector<32x32xbf16>, vector<2x32xf32> -> vector<2x32xf32>
    %111 = arith.addf %108, %110 : vector<2x32xf32>
    %112 = vector.broadcast %16 : vector<1x32xf32> to vector<2x32xf32>
    %113 = arith.addf %111, %112 : vector<2x32xf32>
    %114 = math.tanh %113 : vector<2x32xf32>
    %115 = arith.truncf %114 : vector<2x32xf32> to vector<2x32xbf16>
    %cst_47 = arith.constant dense<0.000000e+00> : vector<2x32xf32>
    %116 = tpu.matmul %115, %10, %cst_47 {dimension_numbers = #tpu.dot_dimension_numbers<[1], [0], [0], [1], [0, 0, 1, 1], [], []>} : vector<2x32xbf16>, vector<32x32xbf16>, vector<2x32xf32> -> vector<2x32xf32>
    %117 = arith.truncf %105 : vector<2x32xf32> to vector<2x32xbf16>
    %cst_48 = arith.constant dense<0.000000e+00> : vector<2x32xf32>
    %118 = tpu.matmul %117, %14, %cst_48 {dimension_numbers = #tpu.dot_dimension_numbers<[1], [0], [0], [1], [0, 0, 1, 1], [], []>} : vector<2x32xbf16>, vector<32x32xbf16>, vector<2x32xf32> -> vector<2x32xf32>
    %119 = arith.addf %116, %118 : vector<2x32xf32>
    %120 = vector.broadcast %18 : vector<1x32xf32> to vector<2x32xf32>
    %121 = arith.addf %119, %120 : vector<2x32xf32>
    %122 = math.tanh %121 : vector<2x32xf32>
    %cst_49 = arith.constant 0.000000e+00 : f32
    %123 = vector.broadcast %cst_49 : f32 to vector<2x32xf32>
    %124 = arith.maximumf %122, %123 : vector<2x32xf32>
    %125 = arith.truncf %124 : vector<2x32xf32> to vector<2x32xbf16>
    %c0_50 = arith.constant 0 : index
    %c0_51 = arith.constant 0 : index
    %126 = vector.load %arg7[%c0_50, %c0_51] : memref<32x4xbf16, #tpu.memory_space<vmem>>, vector<32x4xbf16>
    %cst_52 = arith.constant dense<0.000000e+00> : vector<2x4xf32>
    %127 = tpu.matmul %125, %126, %cst_52 {dimension_numbers = #tpu.dot_dimension_numbers<[1], [0], [0], [1], [0, 0, 1, 1], [], []>} : vector<2x32xbf16>, vector<32x4xbf16>, vector<2x4xf32> -> vector<2x4xf32>
    %c0_53 = arith.constant 0 : index
    %c0_54 = arith.constant 0 : index
    %128 = vector.load %arg8[%c0_53, %c0_54] : memref<1x4xf32, #tpu.memory_space<vmem>>, vector<1x4xf32>
    %129 = vector.broadcast %128 : vector<1x4xf32> to vector<2x4xf32>
    %130 = arith.addf %127, %129 : vector<2x4xf32>
    %c0_55 = arith.constant 0 : index
    %c0_56 = arith.constant 0 : index
    %c0_57 = arith.constant 0 : index
    %131 = vector.load %arg9[%c0_55, %c0_56, %c0_57] : memref<1x2x4xf32, #tpu.memory_space<vmem>>, vector<1x2x4xf32>
    %132 = vector.shape_cast %131 : vector<1x2x4xf32> to vector<2x4xf32>
    %133 = vector.shape_cast %130 : vector<2x4xf32> to vector<1x2x4xf32>
    tpu.vector_store %arg9[%c0_55, %c0_56, %c0_57], %133 {strides = array<i32>} : memref<1x2x4xf32, #tpu.memory_space<vmem>>, vector<1x2x4xf32>,
    return
  }
  func.func @transform_0(%arg0: i32) -> (i32, i32, i32) {
    %c0_i32 = arith.constant 0 : i32
    %c0_i32_0 = arith.constant 0 : i32
    %c0_i32_1 = arith.constant 0 : i32
    return %arg0, %c0_i32, %c0_i32_0 : i32, i32, i32
  }
  func.func @transform_1(%arg0: i32) -> (i32, i32) {
    %c0_i32 = arith.constant 0 : i32
    %c0_i32_0 = arith.constant 0 : i32
    %c0_i32_1 = arith.constant 0 : i32
    return %c0_i32, %c0_i32_0 : i32, i32
  }
  func.func @transform_2(%arg0: i32) -> (i32, i32) {
    %c0_i32 = arith.constant 0 : i32
    %c0_i32_0 = arith.constant 0 : i32
    %c0_i32_1 = arith.constant 0 : i32
    return %c0_i32, %c0_i32_0 : i32, i32
  }
  func.func @transform_3(%arg0: i32) -> (i32, i32, i32) {
    %c0_i32 = arith.constant 0 : i32
    %c0_i32_0 = arith.constant 0 : i32
    %c0_i32_1 = arith.constant 0 : i32
    %c0_i32_2 = arith.constant 0 : i32
    return %c0_i32, %c0_i32_0, %c0_i32_1 : i32, i32, i32
  }
  func.func @transform_4(%arg0: i32) -> (i32, i32, i32) {
    %c0_i32 = arith.constant 0 : i32
    %c0_i32_0 = arith.constant 0 : i32
    %c0_i32_1 = arith.constant 0 : i32
    %c0_i32_2 = arith.constant 0 : i32
    return %c0_i32, %c0_i32_0, %c0_i32_1 : i32, i32, i32
  }
  func.func @transform_5(%arg0: i32) -> (i32, i32, i32) {
    %c0_i32 = arith.constant 0 : i32
    %c0_i32_0 = arith.constant 0 : i32
    %c0_i32_1 = arith.constant 0 : i32
    %c0_i32_2 = arith.constant 0 : i32
    return %c0_i32, %c0_i32_0, %c0_i32_1 : i32, i32, i32
  }
  func.func @transform_6(%arg0: i32) -> (i32, i32) {
    %c0_i32 = arith.constant 0 : i32
    %c0_i32_0 = arith.constant 0 : i32
    %c0_i32_1 = arith.constant 0 : i32
    return %c0_i32, %c0_i32_0 : i32, i32
  }
  func.func @transform_7(%arg0: i32) -> (i32, i32) {
    %c0_i32 = arith.constant 0 : i32
    %c0_i32_0 = arith.constant 0 : i32
    %c0_i32_1 = arith.constant 0 : i32
    return %c0_i32, %c0_i32_0 : i32, i32
  }
  func.func @transform_8(%arg0: i32) -> (i32, i32, i32) {
    %c0_i32 = arith.constant 0 : i32
    %c0_i32_0 = arith.constant 0 : i32
    %c0_i32_1 = arith.constant 0 : i32
    return %arg0, %c0_i32, %c0_i32_0 : i32, i32, i32
  }
}

</mosaic_0001>

<bundles_post_ra>
// kernel: tpu_custom_call.1
= control target key start
LH: loop header
LB: loop body
LE: loop exit
PB: predicated region body
PF: predicated region fallthrough
CT: control target
= control target key end

     0   :  { %13 = vsyncpa [#allocation3], 0  ;;  %s1012_s0 = inlined_call_operand.vmem [shape: bf16[1,12,4], index: 0, kind: input, shape index: {}]   ;;  %s1013_s1 = inlined_call_operand.vmem [shape: bf16[4,32], index: 1, kind: input, shape index: {}]   ;;  %s1014_s2 = inlined_call_operand.vmem [shape: f32[1,32], index: 2, kind: input, shape index: {}]   ;;  %s1015_s3 = inlined_call_operand.hbm [shape: bf16[2,32,32], index: 3, kind: input, shape index: {}]   ;;  %s1016_s4 = inlined_call_operand.hbm [shape: bf16[2,32,32], index: 4, kind: input, shape index: {}]   ;;  %s1017_s5 = inlined_call_operand.vmem [shape: f32[2,1,32], index: 5, kind: input, shape index: {}]   ;;  %s1018_s6 = inlined_call_operand.vmem [shape: bf16[32,4], index: 6, kind: input, shape index: {}]   ;;  %s1019_s7 = inlined_call_operand.vmem [shape: f32[1,4], index: 7, kind: input, shape index: {}]   ;;  %s1020_s8 = inlined_call_operand.hbm [shape: f32[1,2,4], index: 8, kind: output, shape index: {}]  }
   0x1   :  { %14 = vsyncpa [#allocation6], 0 }
   0x2   :  { %15 = vsyncpa [#allocation4], 0  ;;  %s26_s29 = sshll.u32 %s1015_s3, 4  ;;  %s832_s30 = smov [#allocation2]   ;;  %s27_s29 = int_to_ptr.hbm [resolvable:$true] %s26_s29 }
   0x3   :  { %s28_s9 = sshll.u32 %s832_s30, 4  ;;  %s39_s12 = sshll.u32 %s1016_s4, 4  ;;  %s29_s9 = int_to_ptr.vmem [resolvable:$true] %s28_s9  ;;  %s40_s12 = int_to_ptr.hbm [resolvable:$true] %s39_s12 }
   0x4   :  { %s833_s13 = smov 64   ;;  %s834_s14 = smov 4  }
   0x5   :  { %34 = dma.hbm_to_vmem [thread:$0]  %s27_s29, 512, %s29_s9, [#allocation3], %s833_s13, %s833_s13, %s834_s14  }
   0x6   :  { %s835_s15 = smov [#allocation5]  }
   0x7   :  { %s41_s16 = sshll.u32 %s835_s15, 4  ;;  %s42_s16 = int_to_ptr.vmem [resolvable:$true] %s41_s16 }
   0x8   :  { %47 = dma.hbm_to_vmem [thread:$0]  %s40_s12, 512, %s42_s16, [#allocation6], %s833_s13, %s833_s13, %s834_s14  }
   0x9   :  { %826 = dma.done.wait [#allocation3], 512  }
   0xa   :  { %827 = vsyncadd [#allocation3], 4294966784 }
   0xb   :  { %828 = dma.done.wait [#allocation6], 512  }
   0xc   :  { %829 = vsyncadd [#allocation6], 4294966784  ;;  %vm79_vm0 = vcmask 1041408   ;;  %v65_v0 = vld [vmem:[%s1013_s1] sm:$0x3]  ;;  %v898_v5 = vld [vmem:[#allocation5 + $0x8] sm:$0xff] }
   0xd   :  { %v642_v1 = vld [vmem:[%s1012_s0] sm:$0xf]  ;;  %v709_v2 = vld [vmem:[%s1012_s0] sm:$0x30]  ;;  %v81_v3 = vsel %vm79_vm0, %v65_v0, 0  ;;  %v711_v6 = vld [vmem:[#allocation2 + $0x8] sm:$0xff]  ;;  %141 = vmatpush.bf16.msra.mxu1 %v898_v5 }
   0xe   :  { %v643_v4 = vor.u32 %v709_v2, %v642_v1  ;;  %90 = vmatpush.bf16.msra.mxu0 %v81_v3  ;;  %vm75_vm1 = vcmask 31744   ;;  %169 = vmatpush.bf16.msra.mxu2 %v711_v6  ;;  %v901_v7 = vld [vmem:[#allocation5] sm:$0xff]  ;;  %v836_v9 = vmov 0   ;;  %vm131_vm2 = vcmask 261120   ;;  %v915_v19 = vld [vmem:[#allocation5 + $0x18] sm:$0xff]  ;;  %v920_v21 = vld [vmem:[#allocation5 + $0x10] sm:$0xff] }
   0xf   :  { %v710_v8 = vld [vmem:[#allocation2] sm:$0xff]  ;;  %v917_v20 = vld [vmem:[#allocation2 + $0x18] sm:$0xff]  ;;  %200 = vmatpush.bf16.msra.mxu3 %v915_v19  ;;  %v930_v26 = vld [vmem:[#allocation2 + $0x10] sm:$0xff]  ;;  %s837_s29 = smov [#allocation7]   ;;  %s629_s10 = sshll.u32 %s1020_s8, 4  ;;  %vm620_vm3 = vcmask 25600   ;;  %s630_s10 = int_to_ptr.hbm [resolvable:$true] %s629_s10 }
  0x10   :  { %v726_v10 = vld [vmem:[%s1014_s2] ss:$0 sm:$0xff]  ;;  %v954_v46 = vld [vmem:[%s1017_s5 + $0x1] ss:$0 sm:$0xff]  ;;  %s627_s30 = sshll.u32 %s837_s29, 4  ;;  %s628_s30 = int_to_ptr.vmem [resolvable:$true] %s627_s30 }
  0x11   :  { %644 = vmatmul.msk.bf16.vlgmr.msra.gmra.mxu0 %vm75_vm1, %v643_v4  ;;  %142 = vmatpush.bf16.msra.mxu1 %v901_v7  ;;  %v938_v27 = vld [vmem:[%s1017_s5] ss:$0 sm:$0xff] }
  0x12   :  { %170 = vmatpush.bf16.msra.mxu2 %v710_v8  ;;  %228 = vmatpush.bf16.msrb.mxu0 %v917_v20 }
  0x13   :  { %201 = vmatpush.bf16.msra.mxu3 %v920_v21 }
  0x14   :  { %143 = vmatmul.bf16.vlgmr.msra.gmra.mxu1 %v836_v9 }
  0x15   :  { %246 = vmatpush.bf16.msrb.mxu1 %v898_v5 }
  0x16   :  { %264 = vmatpush.bf16.msrb.mxu2 %v711_v6  ;;  %202 = vmatmul.bf16.vlgmr.msra.gmra.mxu3 %v836_v9 }
  0x17   :  { %284 = vmatpush.bf16.msrb.mxu3 %v915_v19  ;;  %229 = vmatpush.bf16.msrb.mxu0 %v930_v26 }
  0x19   :  { %247 = vmatpush.bf16.msrb.mxu1 %v901_v7 }
  0x1a   :  { %265 = vmatpush.bf16.msrb.mxu2 %v710_v8 }
  0x1b   :  { %285 = vmatpush.bf16.msrb.mxu3 %v920_v21  ;;  %300 = vmatpush.bf16.msra.mxu0 %v917_v20 }
  0x1d   :  { %315 = vmatpush.bf16.msra.mxu1 %v898_v5 }
  0x1f   :  { %352 = vmatpush.bf16.msra.mxu3 %v915_v19  ;;  %301 = vmatpush.bf16.msra.mxu0 %v930_v26 }
  0x21   :  { %316 = vmatpush.bf16.msra.mxu1 %v901_v7 }
  0x23   :  { %353 = vmatpush.bf16.msra.mxu3 %v920_v21 }
  0x8e   :  { %v92_v11 = vpop.f32.mrf.mxu0 }
  0x8f   :  { %v93_v12 = vadd.f32 %v726_v10, %v92_v11 }
  0x91   :  { %v118_v13 = vpack.c.bf16 %v93_v12, %v93_v12  ;;  %v144_v24 = vpop.f32.mrf.mxu1 }
  0x93   :  { %662 = vmatmul.msk.bf16.vlgmr.msra.gmra.mxu2 %vm131_vm2, %v118_v13  ;;  %v254_v14 = vrot.slane %v118_v13, 1  ;;  %v322_v15 = vrot.slane %v118_v13, 2  ;;  %v390_v16 = vrot.slane %v118_v13, 3 }
  0x94   :  { %332 = vmatpush.bf16.msra.mxu2 %v711_v6 }
  0x96   :  { %v94_v17 = vpop.f32.mrf.mxu0 }
  0x97   :  { %v95_v18 = vadd.f32 %v726_v10, %v94_v17 }
  0x98   :  { %333 = vmatpush.bf16.msra.mxu2 %v710_v8 }
  0x99   :  { %v445_v22 = vpack.c.bf16 %v95_v18, %v95_v18  ;;  %v146_v25 = vpop.f32.mrf.mxu1  ;;  %v203_v41 = vpop.f32.mrf.mxu3 }
  0x9b   :  { %v527_v23 = vrot.slane %v445_v22, 1 }
  0xa1   :  { %v205_v43 = vpop.f32.mrf.mxu3 }
  0xa3   :  { %681 = vmatmul.msk.bf16.vlgmr.msrb.gmra.mxu2 %vm131_vm2, %v254_v14 }
  0xa4   :  { %400 = vmatpush.bf16.msrb.mxu2 %v711_v6 }
  0xa8   :  { %401 = vmatpush.bf16.msrb.mxu2 %v710_v8 }
  0xb3   :  { %685 = vmatmul.msk.bf16.vlgmr.msra.gmra.mxu2 %vm131_vm2, %v322_v15 }
  0xb4   :  { %468 = vmatpush.bf16.msra.mxu2 %v711_v6 }
  0xb8   :  { %469 = vmatpush.bf16.msra.mxu2 %v710_v8 }
  0xc3   :  { %689 = vmatmul.msk.bf16.vlgmr.msrb.gmra.mxu2 %vm131_vm2, %v390_v16 }
  0xc4   :  { %537 = vmatpush.bf16.msrb.mxu2 %v711_v6 }
  0xc8   :  { %538 = vmatpush.bf16.msrb.mxu2 %v710_v8 }
  0xd3   :  { %693 = vmatmul.msk.bf16.vlgmr.msra.gmra.mxu2 %vm131_vm2, %v445_v22 }
  0xe3   :  { %697 = vmatmul.msk.bf16.vlgmr.msrb.gmra.mxu2 %vm131_vm2, %v527_v23 }
 0x116   :  { %v172_v28 = vpop.f32.mrf.mxu2 }
 0x117   :  { %v173_v29 = vadd.f32 %v172_v28, %v144_v24 }
 0x119   :  { %v179_v30 = vadd.f32 %v938_v27, %v173_v29 }
 0x11b   :  { %730 = vtanh.f32 %v179_v30 }
 0x11e   :  { %v174_v31 = vpop.f32.mrf.mxu2 }
 0x121   :  { %v731_v32 = vpop.eup %730 }
 0x122   :  { %v181_v33 = vpack.c.bf16 %v731_v32, %v731_v32 }
 0x124   :  { %679 = vmatmul.msk.bf16.vlgmr.msrb.gmra.mxu0 %vm131_vm2, %v181_v33  ;;  %680 = vmatmul.msk.bf16.vlgmr.msrb.gmra.mxu1 %vm131_vm2, %v181_v33 }
 0x125   :  { %368 = vmatpush.bf16.msrb.mxu0 %v917_v20  ;;  %383 = vmatpush.bf16.msrb.mxu1 %v898_v5 }
 0x126   :  { %v267_v34 = vpop.f32.mrf.mxu2 }
 0x129   :  { %369 = vmatpush.bf16.msrb.mxu0 %v930_v26  ;;  %384 = vmatpush.bf16.msrb.mxu1 %v901_v7 }
 0x12e   :  { %v269_v35 = vpop.f32.mrf.mxu2 }
 0x136   :  { %v335_v36 = vpop.f32.mrf.mxu2 }
 0x13e   :  { %v337_v37 = vpop.f32.mrf.mxu2 }
 0x146   :  { %v403_v38 = vpop.f32.mrf.mxu2 }
 0x14e   :  { %v405_v39 = vpop.f32.mrf.mxu2 }
 0x156   :  { %v947_v40 = vpop.f32.mrf.mxu2 }
 0x15e   :  { %v473_v42 = vpop.f32.mrf.mxu2 }
 0x166   :  { %v949_v44 = vpop.f32.mrf.mxu2 }
 0x16e   :  { %v542_v45 = vpop.f32.mrf.mxu2 }
 0x1a1   :  { %v231_v47 = vpop.f32.mrf.mxu0  ;;  %v249_v48 = vpop.f32.mrf.mxu1 }
 0x1a2   :  { %v232_v49 = vadd.f32 %v231_v47, %v203_v41  ;;  %v268_v50 = vadd.f32 %v267_v34, %v249_v48 }
 0x1a4   :  { %v238_v51 = vadd.f32 %v954_v46, %v232_v49  ;;  %v271_v52 = vadd.f32 %v938_v27, %v268_v50 }
 0x1a6   :  { %732 = vtanh.f32 %v238_v51 }
 0x1a7   :  { %734 = vtanh.f32 %v271_v52 }
 0x1a9   :  { %v233_v53 = vpop.f32.mrf.mxu0  ;;  %v251_v54 = vpop.f32.mrf.mxu1 }
 0x1ac   :  { %v733_v55 = vpop.eup %732 }
 0x1ad   :  { %v735_v56 = vpop.eup %734  ;;  %v274_v57 = vpack.c.bf16 %v733_v55, %v733_v55  ;;  %v718_v55 = vld [vmem:[%s1018_s6] sm:$0xff] }
 0x1ae   :  { %v273_v58 = vpack.c.bf16 %v735_v56, %v735_v56 }
 0x1af   :  { %682 = vmatmul.msk.bf16.vlgmr.msrb.gmra.mxu3 %vm131_vm2, %v274_v57 }
 0x1b0   :  { %683 = vmatmul.msk.bf16.vlgmr.msra.gmra.mxu0 %vm131_vm2, %v273_v58  ;;  %684 = vmatmul.msk.bf16.vlgmr.msra.gmra.mxu1 %vm131_vm2, %v273_v58 }
 0x1b1   :  { %436 = vmatpush.bf16.msra.mxu0 %v917_v20  ;;  %452 = vmatpush.bf16.msra.mxu1 %v898_v5 }
 0x1b2   :  { %420 = vmatpush.bf16.msrb.mxu3 %v915_v19 }
 0x1b5   :  { %437 = vmatpush.bf16.msra.mxu0 %v930_v26  ;;  %453 = vmatpush.bf16.msra.mxu1 %v901_v7 }
 0x1b6   :  { %421 = vmatpush.bf16.msrb.mxu3 %v920_v21 }
 0x22d   :  { %v303_v59 = vpop.f32.mrf.mxu0  ;;  %v318_v60 = vpop.f32.mrf.mxu1 }
 0x22e   :  { %v336_v61 = vadd.f32 %v335_v36, %v318_v60 }
 0x230   :  { %v339_v62 = vadd.f32 %v938_v27, %v336_v61 }
 0x232   :  { %736 = vtanh.f32 %v339_v62  ;;  %v287_v63 = vpop.f32.mrf.mxu3 }
 0x233   :  { %v304_v0 = vadd.f32 %v303_v59, %v287_v63  ;;  %v729_v63 = vld [vmem:[%s1019_s7] ss:$0 sm:$0xff] }
 0x235   :  { %v307_v1 = vadd.f32 %v954_v46, %v304_v0  ;;  %v305_v2 = vpop.f32.mrf.mxu0  ;;  %v320_v3 = vpop.f32.mrf.mxu1 }
 0x237   :  { %738 = vtanh.f32 %v307_v1 }
 0x238   :  { %v737_v4 = vpop.eup %736 }
 0x239   :  { %v341_v6 = vpack.c.bf16 %v737_v4, %v737_v4 }
 0x23a   :  { %v289_v8 = vpop.f32.mrf.mxu3 }
 0x23b   :  { %687 = vmatmul.msk.bf16.vlgmr.msrb.gmra.mxu0 %vm131_vm2, %v341_v6  ;;  %688 = vmatmul.msk.bf16.vlgmr.msrb.gmra.mxu1 %vm131_vm2, %v341_v6 }
 0x23c   :  { %504 = vmatpush.bf16.msrb.mxu0 %v917_v20  ;;  %519 = vmatpush.bf16.msrb.mxu1 %v898_v5 }
 0x23d   :  { %v739_v9 = vpop.eup %738 }
 0x23e   :  { %v342_v10 = vpack.c.bf16 %v739_v9, %v739_v9 }
 0x240   :  { %686 = vmatmul.msk.bf16.vlgmr.msra.gmra.mxu3 %vm131_vm2, %v342_v10  ;;  %505 = vmatpush.bf16.msrb.mxu0 %v930_v26 }
 0x241   :  { %520 = vmatpush.bf16.msrb.mxu1 %v901_v7  ;;  %488 = vmatpush.bf16.msra.mxu3 %v915_v19 }
 0x245   :  { %489 = vmatpush.bf16.msra.mxu3 %v920_v21 }
 0x2b8   :  { %v371_v11 = vpop.f32.mrf.mxu0  ;;  %v386_v12 = vpop.f32.mrf.mxu1 }
 0x2b9   :  { %v404_v13 = vadd.f32 %v403_v38, %v386_v12 }
 0x2bb   :  { %v407_v14 = vadd.f32 %v938_v27, %v404_v13 }
 0x2bd   :  { %740 = vtanh.f32 %v407_v14 }
 0x2c0   :  { %v373_v15 = vpop.f32.mrf.mxu0  ;;  %v388_v5 = vpop.f32.mrf.mxu1 }
 0x2c3   :  { %v741_v16 = vpop.eup %740  ;;  %v355_v17 = vpop.f32.mrf.mxu3 }
 0x2c4   :  { %v409_v18 = vpack.c.bf16 %v741_v16, %v741_v16  ;;  %v372_v22 = vadd.f32 %v371_v11, %v355_v17 }
 0x2c6   :  { %v375_v23 = vadd.f32 %v954_v46, %v372_v22  ;;  %691 = vmatmul.msk.bf16.vlgmr.msra.gmra.mxu0 %vm131_vm2, %v409_v18  ;;  %692 = vmatmul.msk.bf16.vlgmr.msra.gmra.mxu1 %vm131_vm2, %v409_v18 }
 0x2c7   :  { %573 = vmatpush.bf16.msra.mxu0 %v917_v20 }
 0x2c8   :  { %742 = vtanh.f32 %v375_v23 }
 0x2cb   :  { %v357_v7 = vpop.f32.mrf.mxu3  ;;  %574 = vmatpush.bf16.msra.mxu0 %v930_v26 }
 0x2ce   :  { %v743_v24 = vpop.eup %742 }
 0x2cf   :  { %v410_v25 = vpack.c.bf16 %v743_v24, %v743_v24 }
 0x2d1   :  { %690 = vmatmul.msk.bf16.vlgmr.msrb.gmra.mxu3 %vm131_vm2, %v410_v25 }
 0x2d2   :  { %557 = vmatpush.bf16.msrb.mxu3 %v915_v19 }
 0x2d6   :  { %558 = vmatpush.bf16.msrb.mxu3 %v920_v21 }
 0x343   :  { %v439_v28 = vpop.f32.mrf.mxu0  ;;  %v455_v29 = vpop.f32.mrf.mxu1 }
 0x344   :  { %v472_v30 = vadd.f32 %v947_v40, %v455_v29 }
 0x346   :  { %v475_v31 = vadd.f32 %v938_v27, %v472_v30 }
 0x348   :  { %744 = vtanh.f32 %v475_v31 }
 0x34b   :  { %v441_v20 = vpop.f32.mrf.mxu0  ;;  %v457_v32 = vpop.f32.mrf.mxu1 }
 0x34e   :  { %v745_v33 = vpop.eup %744 }
 0x34f   :  { %v477_v34 = vpack.c.bf16 %v745_v33, %v745_v33 }
 0x351   :  { %695 = vmatmul.msk.bf16.vlgmr.msrb.gmra.mxu0 %vm131_vm2, %v477_v34  ;;  %696 = vmatmul.msk.bf16.vlgmr.msrb.gmra.mxu1 %vm131_vm2, %v477_v34 }
 0x354   :  { %v423_v26 = vpop.f32.mrf.mxu3 }
 0x355   :  { %v440_v35 = vadd.f32 %v439_v28, %v423_v26 }
 0x357   :  { %v443_v19 = vadd.f32 %v954_v46, %v440_v35 }
 0x359   :  { %746 = vtanh.f32 %v443_v19 }
 0x35c   :  { %v425_v21 = vpop.f32.mrf.mxu3 }
 0x35f   :  { %v747_v36 = vpop.eup %746 }
 0x360   :  { %v478_v37 = vpack.c.bf16 %v747_v36, %v747_v36 }
 0x362   :  { %694 = vmatmul.msk.bf16.vlgmr.msra.gmra.mxu3 %vm131_vm2, %v478_v37 }
 0x3ce   :  { %v507_v38 = vpop.f32.mrf.mxu0  ;;  %v522_v39 = vpop.f32.mrf.mxu1 }
 0x3cf   :  { %v541_v40 = vadd.f32 %v949_v44, %v522_v39 }
 0x3d1   :  { %v544_v41 = vadd.f32 %v938_v27, %v541_v40  ;;  %v719_v27 = vld [vmem:[%s1018_s6 + $0x8] sm:$0xff] }
 0x3d2   :  { %613 = vmatpush.bf16.msra.mxu1 %v719_v27 }
 0x3d3   :  { %748 = vtanh.f32 %v544_v41 }
 0x3d6   :  { %v509_v42 = vpop.f32.mrf.mxu0  ;;  %v524_v43 = vpop.f32.mrf.mxu1  ;;  %614 = vmatpush.bf16.msra.mxu1 %v718_v55 }
 0x3d9   :  { %v749_v45 = vpop.eup %748 }
 0x3da   :  { %v546_v47 = vpack.c.bf16 %v749_v45, %v749_v45 }
 0x3dc   :  { %699 = vmatmul.msk.bf16.vlgmr.msra.gmra.mxu0 %vm131_vm2, %v546_v47 }
 0x3e5   :  { %v491_v48 = vpop.f32.mrf.mxu3 }
 0x3e6   :  { %v508_v49 = vadd.f32 %v507_v38, %v491_v48 }
 0x3e8   :  { %v511_v50 = vadd.f32 %v954_v46, %v508_v49 }
 0x3ea   :  { %750 = vtanh.f32 %v511_v50 }
 0x3ed   :  { %v493_v51 = vpop.f32.mrf.mxu3 }
 0x3f0   :  { %v751_v52 = vpop.eup %750 }
 0x3f1   :  { %v547_v53 = vpack.c.bf16 %v751_v52, %v751_v52 }
 0x3f3   :  { %698 = vmatmul.msk.bf16.vlgmr.msrb.gmra.mxu3 %vm131_vm2, %v547_v53 }
 0x459   :  { %v576_v44 = vpop.f32.mrf.mxu0 }
 0x461   :  { %v578_v54 = vpop.f32.mrf.mxu0 }
 0x476   :  { %v560_v56 = vpop.f32.mrf.mxu3 }
 0x477   :  { %v577_v57 = vadd.f32 %v576_v44, %v560_v56 }
 0x479   :  { %v580_v58 = vadd.f32 %v954_v46, %v577_v57 }
 0x47b   :  { %752 = vtanh.f32 %v580_v58 }
 0x47e   :  { %v562_v59 = vpop.f32.mrf.mxu3 }
 0x481   :  { %v753_v60 = vpop.eup %752 }
 0x482   :  { %v582_v61 = vmax.f32 %v753_v60, 0.0 }
 0x484   :  { %v583_v62 = vpack.c.bf16 %v582_v61, %v582_v61 }
 0x486   :  { %708 = vmatmul.msk.bf16.vlgmr.msra.gmra.mxu1 %vm131_vm2, %v583_v62 }
 0x503   :  { %v616_v0 = vpop.f32.mrf.mxu1 }
 0x504   :  { %v617_v46 = vadd.f32 %v729_v63, %v616_v0 }
 0x506   :  { %621 = vst.msk [vmem:[#allocation7] sm:$0x3] %vm620_vm3, %v617_v46 }
 0x507   :  { %632 = dma.vmem_to_hbm [thread:$0]  %s628_s30, 32, %s630_s10, [#allocation4]  }
 0x50b   :  { %v618_v1 = vpop.f32.mrf.mxu1 }
 0x50c   :  { %830 = dma.done.wait [#allocation4], 32  }
 0x50d   :  { %831 = vsyncadd [#allocation4], 4294967264 }
 0x50e   :  { %637 = vsyncpa [#allocation3], 1 }
 0x50f   :  { %638 = vsyncpa [#allocation6], 1 }
 0x510   :  { %639 = vsyncpa [#allocation4], 1 }

</bundles_post_ra>
